<compile_context>
chip_gen: v5e
topology: v5e:2x2
jax: 0.10.0
libtpu: 0.0.40
codegen_flags: <defaults>
</compile_context>

<pallas_src>
import functools

import numpy as np
import jax
import jax.numpy as jnp
from jax import lax
from jax.experimental import pallas as pl
from jax.experimental.pallas import tpu as pltpu

LOG_STD_MAX = 2.0
LOG_STD_MIN = -20.0


# ----------------------------------------------------------------------------
# Fused kernel: pre_fc (Linear+ReLU) + policy head (mu/log_std, rsample,
# log-prob, tanh squash, per-option reduction)
# ----------------------------------------------------------------------------
def _fused_kernel(x_ref, wpre_ref, bpre_ref,
                  hy_ref, wh_ref, bh_ref, sel_ref, eps_ref,
                  h_ref, pi_ref, logp_ref, *, oa, act_limit):
    # ---- pi_pre_fc: ReLU(x @ W_pre + b_pre) -------------------------------
    h = jnp.dot(x_ref[...], wpre_ref[...],
                preferred_element_type=jnp.float32) + bpre_ref[...]
    h_ref[...] = jnp.maximum(h, 0.0)
    # TODO(synk): RIMCell (pi_rnn) would consume h here; its attention-gated multi-unit
    # LSTM recurrence source is not part of this module, so hy is the passthrough hidden
    # state supplied by the caller (hy == hx) rather than a faked recurrence.

    # ---- fused mu/log_std heads: one MXU matmul over K = U*H --------------
    # hy_ref : (B, U*H), wh_ref : (U*H, 2*OA)  (== [tiled w_mu | tiled w_log_std])
    heads = jnp.dot(hy_ref[...], wh_ref[...],
                    preferred_element_type=jnp.float32) + bh_ref[...]
    mu = heads[:, :oa]
    log_std = jnp.clip(heads[:, oa:], LOG_STD_MIN, LOG_STD_MAX)
    std = jnp.exp(log_std)

    eps = eps_ref[...]
    pi = mu + std * eps                                     # rsample

    # Normal(mu, std).log_prob(pi); since pi = mu + std*eps, (pi-mu)/std == eps exactly.
    lp = -0.5 * eps * eps - log_std - 0.5 * jnp.log(2.0 * jnp.pi)
    # tanh-squash correction: 2 * (log 2 - pi - softplus(-2*pi)), stable softplus
    z = -2.0 * pi
    softplus = jnp.maximum(z, 0.0) + jnp.log1p(jnp.exp(-jnp.abs(z)))
    lp = lp - 2.0 * (jnp.log(2.0) - pi - softplus)

    pi_ref[...] = act_limit * jnp.tanh(pi)

    # per-option reduction over act_dim as a matmul with a (OA, O) 0/1 selection matrix
    logp_ref[...] = jnp.dot(lp, sel_ref[...], preferred_element_type=jnp.float32)


# ----------------------------------------------------------------------------
# One-time parameter preparation (hoisted out of the per-step path)
# ----------------------------------------------------------------------------
def prepare_params(params, rim_units):
    O, H, A = params["w_mu"].shape
    OA = O * A
    U = rim_units
    # (O, H, A) -> lane-dense (H, O*A), then vertically tile U times so that the
    # rim-unit sum is folded into the matmul contraction dimension (K = U*H).
    wmu2 = jnp.transpose(params["w_mu"], (1, 0, 2)).reshape(H, OA)
    wls2 = jnp.transpose(params["w_log_std"], (1, 0, 2)).reshape(H, OA)
    w_heads = jnp.concatenate(
        [jnp.tile(wmu2, (U, 1)), jnp.tile(wls2, (U, 1))], axis=1)          # (U*H, 2*OA)
    b_heads = jnp.concatenate(
        [params["b_mu"].reshape(1, OA), params["b_log_std"].reshape(1, OA)], axis=1)
    # block-diagonal selection matrix: sel[o*A + a, o] = 1
    sel = jnp.repeat(jnp.eye(O, dtype=jnp.float32), A, axis=0)             # (OA, O)
    return {
        "w_pre": params["w_pre"].astype(jnp.float32),
        "b_pre": params["b_pre"].reshape(1, -1).astype(jnp.float32),
        "w_heads": w_heads.astype(jnp.float32),
        "b_heads": b_heads.astype(jnp.float32),
        "sel": sel,
        "option_dim": O,
        "act_dim": A,
        "rim_units": U,
        "hidden": H,
    }


# ----------------------------------------------------------------------------
# Wrapper around the single fused pallas_call
# ----------------------------------------------------------------------------
def fused_forward(prep, x, hy, eps, act_limit):
    B, D = x.shape
    H = prep["hidden"]
    U = prep["rim_units"]
    O = prep["option_dim"]
    A = prep["act_dim"]
    OA = O * A
    UH = U * H

    hy_flat = hy.reshape(B, UH)          # contiguous reshape, no transpose
    eps2 = eps.reshape(B, OA)

    kernel = functools.partial(_fused_kernel, oa=OA, act_limit=float(act_limit))

    h_pre, pi2, logp = pl.pallas_call(
        kernel,
        out_shape=(jax.ShapeDtypeStruct((B, H), jnp.float32),
                   jax.ShapeDtypeStruct((B, OA), jnp.float32),
                   jax.ShapeDtypeStruct((B, O), jnp.float32)),
        grid=(1,),
        in_specs=[
            pl.BlockSpec((B, D), lambda i: (0, 0)),
            pl.BlockSpec((D, H), lambda i: (0, 0)),
            pl.BlockSpec((1, H), lambda i: (0, 0)),
            pl.BlockSpec((B, UH), lambda i: (0, 0)),
            pl.BlockSpec((UH, 2 * OA), lambda i: (0, 0)),
            pl.BlockSpec((1, 2 * OA), lambda i: (0, 0)),
            pl.BlockSpec((OA, O), lambda i: (0, 0)),
            pl.BlockSpec((B, OA), lambda i: (0, 0)),
        ],
        out_specs=(pl.BlockSpec((B, H), lambda i: (0, 0)),
                   pl.BlockSpec((B, OA), lambda i: (0, 0)),
                   pl.BlockSpec((B, O), lambda i: (0, 0))),
        compiler_params=pltpu.CompilerParams(dimension_semantics=("arbitrary",)),
    )(x, prep["w_pre"], prep["b_pre"], hy_flat,
      prep["w_heads"], prep["b_heads"], prep["sel"], eps2)

    return h_pre, pi2.reshape(B, O, A), logp


# ----------------------------------------------------------------------------
# Full forward (mirrors IntraOptionPolicy.forward)
# ----------------------------------------------------------------------------
def intra_option_policy_forward(prep, x, hx, cx, option, rng, act_limit):
    if x.ndim == 1:
        x = x[None, :]
    if hx.ndim == 2:
        hx, cx = hx[None], cx[None]

    # TODO(synk): RIMCell (pi_rnn) recurrence source is not part of the provided module;
    # hidden state is passed through unchanged, (hy, cy) = (hx, cx).
    hy, cy = hx, cx

    B = hy.shape[0]
    O = prep["option_dim"]
    A = prep["act_dim"]
    eps = jax.random.normal(rng, (B, O, A), dtype=jnp.float32)   # reparameterization noise

    # single fused Pallas kernel: pre_fc + policy head
    _h_pre, pi_action, logp_pi = fused_forward(prep, x, hy, eps, act_limit)

    # mimic torch's .squeeze(0) (no-op unless leading dim is 1)
    hy_out = hy[0] if hy.shape[0] == 1 else hy
    cy_out = cy[0] if cy.shape[0] == 1 else cy
    return pi_action, logp_pi, (hy_out, cy_out)


# ----------------------------------------------------------------------------
# main
# ----------------------------------------------------------------------------
if __name__ == "__main__":
    B, obs_dim, hidden, rim_units, option_dim, act_dim = 2, 16, 32, 4, 3, 6
    act_limit = 1.0

    key = jax.random.PRNGKey(0)
    ks = jax.random.split(key, 9)

    x = jax.random.normal(ks[0], (B, obs_dim), dtype=jnp.float32)
    hx = 0.5 * jax.random.normal(ks[1], (B, rim_units, hidden), dtype=jnp.float32)
    cx = 0.5 * jax.random.normal(ks[2], (B, rim_units, hidden), dtype=jnp.float32)
    option = jnp.zeros((B, 1, option_dim), dtype=jnp.float32)

    # deterministic synthetic parameters (shapes from __init__)
    params = {
        "w_pre": 0.1 * jax.random.normal(ks[3], (obs_dim, hidden), dtype=jnp.float32),
        "b_pre": jnp.zeros((hidden,), dtype=jnp.float32),
        "w_mu": 0.1 * jax.random.normal(ks[4], (option_dim, hidden, act_dim), dtype=jnp.float32),
        "b_mu": 0.1 * jax.random.normal(ks[5], (option_dim, act_dim), dtype=jnp.float32),
        "w_log_std": 0.1 * jax.random.normal(ks[6], (option_dim, hidden, act_dim), dtype=jnp.float32),
        "b_log_std": 0.1 * jax.random.normal(ks[7], (option_dim, act_dim), dtype=jnp.float32),
    }
    noise_key = ks[8]

    # one-time weight packing (constant for a fixed policy)
    prep = prepare_params(params, rim_units)

    pi_act, logp_pi, (hy_out, cy_out) = intra_option_policy_forward(
        prep, x, hx, cx, option, noise_key, act_limit)
    jax.block_until_ready((pi_act, logp_pi, hy_out, cy_out))

    assert pi_act.shape == (B, option_dim, act_dim)
    assert logp_pi.shape == (B, option_dim)

    # pure-JAX reference for the head math (same eps)
    eps = jax.random.normal(noise_key, (B, option_dim, act_dim), dtype=jnp.float32)
    hs = hx.sum(axis=1)
    mu_r = jnp.einsum('bh,oha->boa', hs, params["w_mu"],
                      precision=lax.Precision.HIGHEST) + params["b_mu"]
    ls_r = jnp.einsum('bh,oha->boa', hs, params["w_log_std"],
                      precision=lax.Precision.HIGHEST) + params["b_log_std"]
    ls_r = jnp.clip(ls_r, LOG_STD_MIN, LOG_STD_MAX)
    std_r = jnp.exp(ls_r)
    pi_raw = mu_r + std_r * eps
    lp_r = (-0.5 * ((pi_raw - mu_r) / std_r) ** 2 - ls_r
            - 0.5 * jnp.log(2.0 * jnp.pi)).sum(-1)
    lp_r = lp_r - (2.0 * (jnp.log(2.0) - pi_raw - jax.nn.softplus(-2.0 * pi_raw))).sum(-1)
    pi_r = act_limit * jnp.tanh(pi_raw)

    np.testing.assert_allclose(np.asarray(pi_act), np.asarray(pi_r), rtol=1e-2, atol=1e-2)
    np.testing.assert_allclose(np.asarray(logp_pi), np.asarray(lp_r), rtol=1e-2, atol=1e-2)

    # also check the pre_fc path inside the fused kernel against a pure-JAX reference
    _h_pre_chk, _, _ = fused_forward(prep, x, hx, eps, act_limit)
    h_ref = jnp.maximum(x @ params["w_pre"] + params["b_pre"], 0.0)
    np.testing.assert_allclose(np.asarray(_h_pre_chk), np.asarray(h_ref), rtol=1e-3, atol=1e-3)

    print("KERNEL_OK")
</pallas_src>

<mosaic_0001>
module attributes {stable_mosaic.version = 11 : i64} {
  func.func @_fused_kernel(%arg0: i32, %arg1: memref<2x16xf32, #tpu.memory_space<vmem>>, %arg2: memref<16x32xf32, #tpu.memory_space<vmem>>, %arg3: memref<1x32xf32, #tpu.memory_space<vmem>>, %arg4: memref<2x128xf32, #tpu.memory_space<vmem>>, %arg5: memref<128x36xf32, #tpu.memory_space<vmem>>, %arg6: memref<1x36xf32, #tpu.memory_space<vmem>>, %arg7: memref<18x3xf32, #tpu.memory_space<vmem>>, %arg8: memref<2x18xf32, #tpu.memory_space<vmem>>, %arg9: memref<2x32xf32, #tpu.memory_space<vmem>>, %arg10: memref<2x18xf32, #tpu.memory_space<vmem>>, %arg11: memref<2x3xf32, #tpu.memory_space<vmem>>) attributes {dimension_semantics = [#tpu.dimension_semantics<arbitrary>], iteration_bounds = array<i64: 1>, scalar_prefetch = 0 : i64, scratch_operands = 0 : i64, tpu.core_type = #tpu.core_type<tc>, window_params = [{pipeline_mode = #tpu.pipeline_mode<synchronous>, transform_indices = @transform_0, window_bounds = array<i64: 2, 16>}, {pipeline_mode = #tpu.pipeline_mode<synchronous>, transform_indices = @transform_1, window_bounds = array<i64: 16, 32>}, {pipeline_mode = #tpu.pipeline_mode<synchronous>, transform_indices = @transform_2, window_bounds = array<i64: 1, 32>}, {pipeline_mode = #tpu.pipeline_mode<synchronous>, transform_indices = @transform_3, window_bounds = array<i64: 2, 128>}, {pipeline_mode = #tpu.pipeline_mode<synchronous>, transform_indices = @transform_4, window_bounds = array<i64: 128, 36>}, {pipeline_mode = #tpu.pipeline_mode<synchronous>, transform_indices = @transform_5, window_bounds = array<i64: 1, 36>}, {pipeline_mode = #tpu.pipeline_mode<synchronous>, transform_indices = @transform_6, window_bounds = array<i64: 18, 3>}, {pipeline_mode = #tpu.pipeline_mode<synchronous>, transform_indices = @transform_7, window_bounds = array<i64: 2, 18>}, {pipeline_mode = #tpu.pipeline_mode<synchronous>, transform_indices = @transform_8, window_bounds = array<i64: 2, 32>}, {pipeline_mode = #tpu.pipeline_mode<synchronous>, transform_indices = @transform_9, window_bounds = array<i64: 2, 18>}, {pipeline_mode = #tpu.pipeline_mode<synchronous>, transform_indices = @transform_10, window_bounds = array<i64: 2, 3>}]} {
    %c0 = arith.constant 0 : index
    %c0_0 = arith.constant 0 : index
    %0 = vector.load %arg1[%c0, %c0_0] : memref<2x16xf32, #tpu.memory_space<vmem>>, vector<2x16xf32>
    %c0_1 = arith.constant 0 : index
    %c0_2 = arith.constant 0 : index
    %1 = vector.load %arg2[%c0_1, %c0_2] : memref<16x32xf32, #tpu.memory_space<vmem>>, vector<16x32xf32>
    %cst = arith.constant dense<0.000000e+00> : vector<2x32xf32>
    %2 = tpu.matmul %0, %1, %cst {dimension_numbers = #tpu.dot_dimension_numbers<[1], [0], [0], [1], [0, 0, 1, 1], [], []>} : vector<2x16xf32>, vector<16x32xf32>, vector<2x32xf32> -> vector<2x32xf32>
    %c0_3 = arith.constant 0 : index
    %c0_4 = arith.constant 0 : index
    %3 = vector.load %arg3[%c0_3, %c0_4] : memref<1x32xf32, #tpu.memory_space<vmem>>, vector<1x32xf32>
    %4 = vector.broadcast %3 : vector<1x32xf32> to vector<2x32xf32>
    %5 = arith.addf %2, %4 : vector<2x32xf32>
    %cst_5 = arith.constant 0.000000e+00 : f32
    %6 = vector.broadcast %cst_5 : f32 to vector<2x32xf32>
    %7 = arith.maximumf %5, %6 : vector<2x32xf32>
    %c0_6 = arith.constant 0 : index
    %c0_7 = arith.constant 0 : index
    %8 = vector.load %arg9[%c0_6, %c0_7] : memref<2x32xf32, #tpu.memory_space<vmem>>, vector<2x32xf32>
    tpu.vector_store %arg9[%c0_6, %c0_7], %7 {strides = array<i32>} : memref<2x32xf32, #tpu.memory_space<vmem>>, vector<2x32xf32>,
    %c0_8 = arith.constant 0 : index
    %c0_9 = arith.constant 0 : index
    %9 = vector.load %arg4[%c0_8, %c0_9] : memref<2x128xf32, #tpu.memory_space<vmem>>, vector<2x128xf32>
    %c0_10 = arith.constant 0 : index
    %c0_11 = arith.constant 0 : index
    %10 = vector.load %arg5[%c0_10, %c0_11] : memref<128x36xf32, #tpu.memory_space<vmem>>, vector<128x36xf32>
    %cst_12 = arith.constant dense<0.000000e+00> : vector<2x36xf32>
    %11 = tpu.matmul %9, %10, %cst_12 {dimension_numbers = #tpu.dot_dimension_numbers<[1], [0], [0], [1], [0, 0, 1, 1], [], []>} : vector<2x128xf32>, vector<128x36xf32>, vector<2x36xf32> -> vector<2x36xf32>
    %c0_13 = arith.constant 0 : index
    %c0_14 = arith.constant 0 : index
    %12 = vector.load %arg6[%c0_13, %c0_14] : memref<1x36xf32, #tpu.memory_space<vmem>>, vector<1x36xf32>
    %13 = vector.broadcast %12 : vector<1x36xf32> to vector<2x36xf32>
    %14 = arith.addf %11, %13 : vector<2x36xf32>
    %15 = vector.extract_strided_slice %14 {offsets = [0, 0], sizes = [2, 18], strides = [1, 1]} : vector<2x36xf32> to vector<2x18xf32>
    %16 = vector.extract_strided_slice %14 {offsets = [0, 18], sizes = [2, 18], strides = [1, 1]} : vector<2x36xf32> to vector<2x18xf32>
    %cst_15 = arith.constant -2.000000e+01 : f32
    %cst_16 = arith.constant 2.000000e+00 : f32
    %17 = vector.broadcast %cst_15 : f32 to vector<2x18xf32>
    %18 = arith.maximumf %17, %16 : vector<2x18xf32>
    %19 = vector.broadcast %cst_16 : f32 to vector<2x18xf32>
    %20 = arith.minimumf %19, %18 : vector<2x18xf32>
    %21 = math.exp %20 : vector<2x18xf32>
    %c0_17 = arith.constant 0 : index
    %c0_18 = arith.constant 0 : index
    %22 = vector.load %arg8[%c0_17, %c0_18] : memref<2x18xf32, #tpu.memory_space<vmem>>, vector<2x18xf32>
    %23 = arith.mulf %21, %22 : vector<2x18xf32>
    %24 = arith.addf %15, %23 : vector<2x18xf32>
    %cst_19 = arith.constant -5.000000e-01 : f32
    %25 = vector.broadcast %cst_19 : f32 to vector<2x18xf32>
    %26 = arith.mulf %25, %22 : vector<2x18xf32>
    %27 = arith.mulf %26, %22 : vector<2x18xf32>
    %28 = arith.subf %27, %20 : vector<2x18xf32>
    %cst_20 = arith.constant 6.28318548 : f32
    %29 = math.log %cst_20 : f32
    %cst_21 = arith.constant 5.000000e-01 : f32
    %30 = arith.mulf %cst_21, %29 : f32
    %31 = vector.broadcast %30 : f32 to vector<2x18xf32>
    %32 = arith.subf %28, %31 : vector<2x18xf32>
    %cst_22 = arith.constant -2.000000e+00 : f32
    %33 = vector.broadcast %cst_22 : f32 to vector<2x18xf32>
    %34 = arith.mulf %33, %24 : vector<2x18xf32>
    %cst_23 = arith.constant 0.000000e+00 : f32
    %35 = vector.broadcast %cst_23 : f32 to vector<2x18xf32>
    %36 = arith.maximumf %34, %35 : vector<2x18xf32>
    %37 = math.absf %34 : vector<2x18xf32>
    %cst_24 = arith.constant 0.000000e+00 : f32
    %38 = vector.broadcast %cst_24 : f32 to vector<2x18xf32>
    %39 = arith.subf %38, %37 : vector<2x18xf32>
    %40 = math.exp %39 : vector<2x18xf32>
    %41 = math.log1p %40 : vector<2x18xf32>
    %42 = arith.addf %36, %41 : vector<2x18xf32>
    %cst_25 = arith.constant 2.000000e+00 : f32
    %43 = math.log %cst_25 : f32
    %44 = vector.broadcast %43 : f32 to vector<2x18xf32>
    %45 = arith.subf %44, %24 : vector<2x18xf32>
    %46 = arith.subf %45, %42 : vector<2x18xf32>
    %cst_26 = arith.constant 2.000000e+00 : f32
    %47 = vector.broadcast %cst_26 : f32 to vector<2x18xf32>
    %48 = arith.mulf %47, %46 : vector<2x18xf32>
    %49 = arith.subf %32, %48 : vector<2x18xf32>
    %50 = math.tanh %24 : vector<2x18xf32>
    %cst_27 = arith.constant 1.000000e+00 : f32
    %51 = vector.broadcast %cst_27 : f32 to vector<2x18xf32>
    %52 = arith.mulf %51, %50 : vector<2x18xf32>
    %c0_28 = arith.constant 0 : index
    %c0_29 = arith.constant 0 : index
    %53 = vector.load %arg10[%c0_28, %c0_29] : memref<2x18xf32, #tpu.memory_space<vmem>>, vector<2x18xf32>
    tpu.vector_store %arg10[%c0_28, %c0_29], %52 {strides = array<i32>} : memref<2x18xf32, #tpu.memory_space<vmem>>, vector<2x18xf32>,
    %c0_30 = arith.constant 0 : index
    %c0_31 = arith.constant 0 : index
    %54 = vector.load %arg7[%c0_30, %c0_31] : memref<18x3xf32, #tpu.memory_space<vmem>>, vector<18x3xf32>
    %cst_32 = arith.constant dense<0.000000e+00> : vector<2x3xf32>
    %55 = tpu.matmul %49, %54, %cst_32 {dimension_numbers = #tpu.dot_dimension_numbers<[1], [0], [0], [1], [0, 0, 1, 1], [], []>} : vector<2x18xf32>, vector<18x3xf32>, vector<2x3xf32> -> vector<2x3xf32>
    %c0_33 = arith.constant 0 : index
    %c0_34 = arith.constant 0 : index
    %56 = vector.load %arg11[%c0_33, %c0_34] : memref<2x3xf32, #tpu.memory_space<vmem>>, vector<2x3xf32>
    tpu.vector_store %arg11[%c0_33, %c0_34], %55 {strides = array<i32>} : memref<2x3xf32, #tpu.memory_space<vmem>>, vector<2x3xf32>,
    return
  }
  func.func @transform_0(%arg0: i32) -> (i32, i32) {
    %c0_i32 = arith.constant 0 : i32
    %c0_i32_0 = arith.constant 0 : i32
    %c0_i32_1 = arith.constant 0 : i32
    return %c0_i32, %c0_i32_0 : i32, i32
  }
  func.func @transform_1(%arg0: i32) -> (i32, i32) {
    %c0_i32 = arith.constant 0 : i32
    %c0_i32_0 = arith.constant 0 : i32
    %c0_i32_1 = arith.constant 0 : i32
    return %c0_i32, %c0_i32_0 : i32, i32
  }
  func.func @transform_2(%arg0: i32) -> (i32, i32) {
    %c0_i32 = arith.constant 0 : i32
    %c0_i32_0 = arith.constant 0 : i32
    %c0_i32_1 = arith.constant 0 : i32
    return %c0_i32, %c0_i32_0 : i32, i32
  }
  func.func @transform_3(%arg0: i32) -> (i32, i32) {
    %c0_i32 = arith.constant 0 : i32
    %c0_i32_0 = arith.constant 0 : i32
    %c0_i32_1 = arith.constant 0 : i32
    return %c0_i32, %c0_i32_0 : i32, i32
  }
  func.func @transform_4(%arg0: i32) -> (i32, i32) {
    %c0_i32 = arith.constant 0 : i32
    %c0_i32_0 = arith.constant 0 : i32
    %c0_i32_1 = arith.constant 0 : i32
    return %c0_i32, %c0_i32_0 : i32, i32
  }
  func.func @transform_5(%arg0: i32) -> (i32, i32) {
    %c0_i32 = arith.constant 0 : i32
    %c0_i32_0 = arith.constant 0 : i32
    %c0_i32_1 = arith.constant 0 : i32
    return %c0_i32, %c0_i32_0 : i32, i32
  }
  func.func @transform_6(%arg0: i32) -> (i32, i32) {
    %c0_i32 = arith.constant 0 : i32
    %c0_i32_0 = arith.constant 0 : i32
    %c0_i32_1 = arith.constant 0 : i32
    return %c0_i32, %c0_i32_0 : i32, i32
  }
  func.func @transform_7(%arg0: i32) -> (i32, i32) {
    %c0_i32 = arith.constant 0 : i32
    %c0_i32_0 = arith.constant 0 : i32
    %c0_i32_1 = arith.constant 0 : i32
    return %c0_i32, %c0_i32_0 : i32, i32
  }
  func.func @transform_8(%arg0: i32) -> (i32, i32) {
    %c0_i32 = arith.constant 0 : i32
    %c0_i32_0 = arith.constant 0 : i32
    %c0_i32_1 = arith.constant 0 : i32
    return %c0_i32, %c0_i32_0 : i32, i32
  }
  func.func @transform_9(%arg0: i32) -> (i32, i32) {
    %c0_i32 = arith.constant 0 : i32
    %c0_i32_0 = arith.constant 0 : i32
    %c0_i32_1 = arith.constant 0 : i32
    return %c0_i32, %c0_i32_0 : i32, i32
  }
  func.func @transform_10(%arg0: i32) -> (i32, i32) {
    %c0_i32 = arith.constant 0 : i32
    %c0_i32_0 = arith.constant 0 : i32
    %c0_i32_1 = arith.constant 0 : i32
    return %c0_i32, %c0_i32_0 : i32, i32
  }
}

</mosaic_0001>

<bundles_post_ra>
// kernel: tpu_custom_call.1
= control target key start
LH: loop header
LB: loop body
LE: loop exit
PB: predicated region body
PF: predicated region fallthrough
CT: control target
= control target key end

     0   :  { %16 = vsyncpa [#allocation3], 0  ;;  %s330_s25 = smov 18   ;;  %s482_s0 = inlined_call_operand.vmem [shape: f32[2,16], index: 0, kind: input, shape index: {}]   ;;  %s483_s1 = inlined_call_operand.vmem [shape: f32[16,32], index: 1, kind: input, shape index: {}]   ;;  %s484_s2 = inlined_call_operand.vmem [shape: f32[1,32], index: 2, kind: input, shape index: {}]   ;;  %s485_s3 = inlined_call_operand.vmem [shape: f32[2,128], index: 3, kind: input, shape index: {}]   ;;  %s486_s4 = inlined_call_operand.vmem [shape: f32[128,36], index: 4, kind: input, shape index: {}]   ;;  %s487_s5 = inlined_call_operand.vmem [shape: f32[1,36], index: 5, kind: input, shape index: {}]   ;;  %s488_s6 = inlined_call_operand.vmem [shape: f32[18,3], index: 6, kind: input, shape index: {}]   ;;  %s489_s7 = inlined_call_operand.vmem [shape: f32[2,18], index: 7, kind: input, shape index: {}]   ;;  %s490_s8 = inlined_call_operand.hbm [shape: f32[2,32], index: 8, kind: output, shape index: {0}]   ;;  %s491_s9 = inlined_call_operand.hbm [shape: f32[2,18], index: 9, kind: output, shape index: {1}]   ;;  %s492_s10 = inlined_call_operand.hbm [shape: f32[2,3], index: 10, kind: output, shape index: {2}]  }
   0x1   :  { %v84_v0 = vld [vmem:[%s486_s4 + $0x78] sm:$0xff]  ;;  %v83_v1 = vld [vmem:[%s486_s4 + $0x70] sm:$0xff]  ;;  %v82_v2 = vld [vmem:[%s486_s4 + $0x68] sm:$0xff] }
   0x2   :  { %89 = vmatpush.msra.mxu1 %v84_v0  ;;  %v81_v3 = vld [vmem:[%s486_s4 + $0x60] sm:$0xff]  ;;  %v80_v5 = vld [vmem:[%s486_s4 + $0x58] sm:$0xff] }
   0x3   :  { %v405_v4 = vld [vmem:[%s489_s7] sm:$0x3] }
   0x4   :  { %90 = vmatpush.msra.mxu1 %v83_v1  ;;  %115 = vrot.lane.b32.xlu0 %v405_v4, %s330_s25 }
   0x6   :  { %91 = vmatpush.msra.mxu1 %v82_v2 }
   0x8   :  { %92 = vmatpush.msra.mxu1 %v81_v3 }
   0x9   :  { %17 = vsyncpa [#allocation5], 0  ;;  %v79_v6 = vld [vmem:[%s486_s4 + $0x50] sm:$0xff]  ;;  %v78_v7 = vld [vmem:[%s486_s4 + $0x48] sm:$0xff]  ;;  %s331_s30 = smov 110   ;;  %vm162_vm0 = vcmask 1041408  }
   0xa   :  { %93 = vmatpush.msra.mxu1 %v80_v5  ;;  %v77_v8 = vld [vmem:[%s486_s4 + $0x40] sm:$0xff]  ;;  %v76_v9 = vld [vmem:[%s486_s4 + $0x38] sm:$0xff]  ;;  %v75_v10 = vld [vmem:[%s486_s4 + $0x30] sm:$0xff]  ;;  %vm41_vm1 = vcmask 130048   ;;  %vm153_vm2 = vcmask 140288   ;;  %v124_v43 = vmul.f32 -0.5, %v405_v4 }
   0xb   :  { %v74_v11 = vld [vmem:[%s486_s4 + $0x28] sm:$0xff]  ;;  %v73_v12 = vld [vmem:[%s486_s4 + $0x20] sm:$0xff]  ;;  %v72_v13 = vld [vmem:[%s486_s4 + $0x18] sm:$0xff]  ;;  %vm158_vm4 = vcmask 146432   ;;  %s206_s21 = sshll.u32 %s491_s9, 4  ;;  %s333_s24 = smov [#allocation2]   ;;  %s207_s21 = int_to_ptr.hbm [resolvable:$true] %s206_s21 }
   0xc   :  { %94 = vmatpush.msra.mxu1 %v79_v6  ;;  %v71_v14 = vld [vmem:[%s486_s4 + $0x10] sm:$0xff]  ;;  %v70_v15 = vld [vmem:[%s486_s4 + $0x8] sm:$0xff]  ;;  %v69_v16 = vld [vmem:[%s486_s4] sm:$0xff]  ;;  %v125_v47 = vmul.f32 %v124_v43, %v405_v4  ;;  %s193_s25 = sshll.u32 %s333_s24, 4  ;;  %s195_s28 = sshll.u32 %s490_s8, 4  ;;  %vm66_vm5 = vcmask 254976   ;;  %s194_s25 = int_to_ptr.vmem [resolvable:$true] %s193_s25  ;;  %s196_s28 = int_to_ptr.hbm [resolvable:$true] %s195_s28 }
   0xd   :  { %v68_v17 = vld [vmem:[%s485_s3] sm:$0x3]  ;;  %v157_v27 = vld [vmem:[%s488_s6 + $0x10] sm:$0x3]  ;;  %v156_v28 = vld [vmem:[%s488_s6 + $0x8] sm:$0xff]  ;;  %s334_s9 = smov [#allocation6]  }
   0xe   :  { %95 = vmatpush.msra.mxu1 %v78_v7  ;;  %v244_v18 = vld [vmem:[%s487_s5] ss:$0 sm:$0xff]  ;;  %v36_v29 = vld [vmem:[%s483_s1 + $0x8] sm:$0xff]  ;;  %237 = vmatpush.msk.msra.mxu2 %vm162_vm0, %v157_v27  ;;  %s215_s29 = sshll.u32 %s334_s9, 4  ;;  %vm186_vm6 = vcmask 17408   ;;  %s216_s29 = int_to_ptr.vmem [resolvable:$true] %s215_s29 }
   0xf   :  { %59 = vmatpush.msra.mxu0 %v36_v29  ;;  %v155_v30 = vld [vmem:[%s488_s6] sm:$0xff] }
  0x10   :  { %96 = vmatpush.msra.mxu1 %v77_v8  ;;  %180 = vmatpush.msra.mxu2 %v156_v28  ;;  %v35_v35 = vld [vmem:[%s483_s1] sm:$0xff] }
  0x11   :  { %v34_v36 = vld [vmem:[%s482_s0] sm:$0x3]  ;;  %60 = vmatpush.msra.mxu0 %v35_v35  ;;  %s332_s0 = smov [#allocation4]  }
  0x12   :  { %97 = vmatpush.msra.mxu1 %v76_v9  ;;  %181 = vmatpush.msra.mxu2 %v155_v30  ;;  %s204_s1 = sshll.u32 %s332_s0, 4  ;;  %v245_v60 = vld [vmem:[%s484_s2] ss:$0 sm:$0xff]  ;;  %s217_s2 = sshll.u32 %s492_s10, 4  ;;  %s205_s1 = int_to_ptr.vmem [resolvable:$true] %s204_s1  ;;  %s218_s2 = int_to_ptr.hbm [resolvable:$true] %s217_s2 }
  0x13   :  { %235 = vmatmul.msk.f32.vlgmr.msra.gmra.mxu0 %vm41_vm1, %v34_v36 }
  0x14   :  { %98 = vmatpush.msra.mxu1 %v75_v10 }
  0x16   :  { %99 = vmatpush.msra.mxu1 %v74_v11 }
  0x18   :  { %100 = vmatpush.msra.mxu1 %v73_v12 }
  0x1a   :  { %101 = vmatpush.msra.mxu1 %v72_v13 }
  0x1c   :  { %102 = vmatpush.msra.mxu1 %v71_v14 }
  0x1e   :  { %103 = vmatpush.msra.mxu1 %v70_v15 }
  0x20   :  { %104 = vmatpush.msra.mxu1 %v69_v16 }
  0x21   :  { %105 = vmatmul.f32.vlgmr.msra.gmra.mxu1 %v68_v17 }
  0x76   :  { %v116_v24 = vpop.permute.xlu0 %115 }
  0x90   :  { %v62_v61 = vpop.f32.mrf.mxu0 }
  0x91   :  { %v63_v62 = vadd.f32 %v245_v60, %v62_v61 }
  0x93   :  { %v65_v63 = vmax.f32 %v63_v62, 0.0 }
  0x95   :  { %67 = vst.msk [vmem:[#allocation2] sm:$0x3] %vm66_vm5, %v65_v63 }
  0x96   :  { %198 = dma.vmem_to_hbm [thread:$0]  %s194_s25, 32, %s196_s28, [#allocation3]  }
  0x9e   :  { %v106_v19 = vpop.f32.mrf.mxu1 }
  0x9f   :  { %v107_v20 = vadd.f32 %v244_v18, %v106_v19 }
  0xa1   :  { %v109_v21 = vmax.f32 %v107_v20, -20.0 }
  0xa3   :  { %v110_v22 = vmin.f32 %v109_v21, 2.0 }
  0xa5   :  { %127 = vrot.lane.b32.xlu1 %v110_v22, %s331_s30  ;;  %v111_v23 = vmul.f32 1.442695, %v110_v22 }
  0xa7   :  { %246 = vpow2.f32 %v111_v23 }
  0xad   :  { %v247_v25 = vpop.eup %246 }
  0xae   :  { %v118_v26 = vmul.f32 %v247_v25, %v116_v24 }
  0xb0   :  { %120 = vrot.lane.b32.xlu0 %v118_v26, %s331_s30 }
 0x117   :  { %v128_v48 = vpop.permute.xlu1 %127 }
 0x118   :  { %v130_v53 = vsub.f32 %v125_v47, %v128_v48 }
 0x11a   :  { %v236_v57 = vadd.f32 -0.9189385, %v130_v53 }
 0x122   :  { %v121_v31 = vpop.permute.xlu0 %120 }
 0x123   :  { %v123_v32 = vadd.f32 %v121_v31, %v107_v20 }
 0x125   :  { %v132_v33 = vmul.f32 -2.0, %v123_v32  ;;  %248 = vtanh.f32 %v123_v32  ;;  %v148_v54 = vsub.f32 0.6931472, %v123_v32 }
 0x127   :  { %v134_v34 = vand.u32 2147483647, %v132_v33  ;;  %v133_v51 = vmax.f32 %v132_v33, 0.0 }
 0x129   :  { %v135_v37 = vsub.f32 0.0, %v134_v34 }
 0x12b   :  { %v249_v38 = vpop.eup %248  ;;  %v136_v39 = vmul.f32 1.442695, %v135_v37 }
 0x12c   :  { %154 = vst.msk [vmem:[#allocation4] sm:$0x3] %vm153_vm2, %v249_v38 }
 0x12d   :  { %250 = vpow2.f32 %v136_v39  ;;  %209 = dma.vmem_to_hbm [thread:$0]  %s205_s1, 32, %s207_s21, [#allocation5]  }
 0x133   :  { %v251_v40 = vpop.eup %250 }
 0x134   :  { %v138_v41 = vadd.f32 1.0, %v251_v40  ;;  %v141_v42 = vmul.f32 -0.5, %v251_v40  ;;  %v144_v45 = vand.u32 2147483647, %v251_v40 }
 0x136   :  { %252 = vlog2.f32 %v138_v41  ;;  %v142_v44 = vadd.f32 1.0, %v141_v42  ;;  %vm145_vm3 = vcmp.lt.f32.partialorder %v144_v45, 0.0004427343 }
 0x138   :  { %v143_v50 = vmul.f32 %v251_v40, %v142_v44 }
 0x13c   :  { %v253_v46 = vpop.eup %252 }
 0x13d   :  { %v140_v49 = vmul.f32 0.6931472, %v253_v46 }
 0x13f   :  { %v146_v52 = vsel %vm145_vm3, %v143_v50, %v140_v49 }
 0x140   :  { %v147_v55 = vadd.f32 %v146_v52, %v133_v51 }
 0x142   :  { %v149_v56 = vsub.f32 %v148_v54, %v147_v55 }
 0x144   :  { %v150_v58 = vmul.f32 2.0, %v149_v56 }
 0x146   :  { %v151_v59 = vsub.f32 %v236_v57, %v150_v58 }
 0x148   :  { %238 = vmatmul.msk.f32.vlgmr.msra.gmra.mxu2 %vm158_vm4, %v151_v59 }
 0x1cb   :  { %v183_v0 = vpop.f32.mrf.mxu2 }
 0x1cc   :  { %187 = vst.msk [vmem:[#allocation6] sm:$0x3] %vm186_vm6, %v183_v0 }
 0x1cd   :  { %220 = dma.vmem_to_hbm [thread:$0]  %s216_s29, 32, %s218_s2, [#allocation5]  }
 0x1ce   :  { %326 = dma.done.wait [#allocation3], 32  }
 0x1cf   :  { %327 = vsyncadd [#allocation3], 4294967264 }
 0x1d0   :  { %328 = dma.done.wait [#allocation5], 64  }
 0x1d1   :  { %329 = vsyncadd [#allocation5], 4294967232 }
 0x1d2   :  { %233 = vsyncpa [#allocation3], 1 }
 0x1d3   :  { %234 = vsyncpa [#allocation5], 1 }

</bundles_post_ra>
